<compile_context>
chip_gen: v7x
topology: tpu7x:2x2x1
jax: 0.10.0
libtpu: 0.0.40
codegen_flags: <defaults>
</compile_context>

<pallas_src>
import functools
import math

import jax
import jax.numpy as jnp
from jax import lax
from jax.experimental import pallas as pl
from jax.experimental.pallas import tpu as pltpu

NUM_OF_CLASSES = 10


def _round_up(x, n):
    return (x + n - 1) // n * n


def _vmem_limit_bytes(step_bytes):
    """Scoped-VMEM limit: double-buffered working set + headroom, capped below
    the physical per-core VMEM of the current TPU generation."""
    cap = 64 << 20                       # conservative fallback (v7x per-TC)
    try:
        info = pltpu.get_tpu_info()
        cap = int(getattr(info, "vmem_capacity_bytes", cap)) or cap
    except Exception:
        pass
    return int(min(max(3 * step_bytes, 16 << 20), (cap * 3) // 4))


# ---------------------------------------------------------------------------
# Pre-pass: row-wise L2 normalization (optionally scaled), gridded over rows.
# Emits the matmul-operand dtype (bf16 by default) to halve HBM/VMEM bytes.
# ---------------------------------------------------------------------------
def _l2norm_rows_kernel(x_ref, o_ref, *, scale):
    x = x_ref[...].astype(jnp.float32)                      # (TR, Dp)
    sumsq = jnp.sum(x * x, axis=-1, keepdims=True)          # (TR, 1)
    inv = lax.rsqrt(jnp.maximum(sumsq, 1e-12)) * scale      # eps-guarded
    o_ref[...] = (x * inv).astype(o_ref.dtype)


def _l2norm_rows(x, *, scale, row_tile, out_dtype):
    R, D = x.shape
    step_bytes = row_tile * D * (x.dtype.itemsize + jnp.dtype(out_dtype).itemsize)
    return pl.pallas_call(
        functools.partial(_l2norm_rows_kernel, scale=float(scale)),
        out_shape=jax.ShapeDtypeStruct((R, D), out_dtype),
        grid=(R // row_tile,),
        in_specs=[pl.BlockSpec((row_tile, D), lambda i: (i, 0))],
        out_specs=pl.BlockSpec((row_tile, D), lambda i: (i, 0)),
        compiler_params=pltpu.CompilerParams(
            dimension_semantics=("parallel",),
            vmem_limit_bytes=_vmem_limit_bytes(step_bytes)),
    )(x)


# ---------------------------------------------------------------------------
# Main tiled kernel: fused weight L2-norm + fc7 matmul + CosFace margin.
# ---------------------------------------------------------------------------
def _lmcl_tile_kernel(flag_ref, label_ref, feat_ref, w_ref, out_ref, *,
                      tile_c, inv_s, cos_m_s, sin_m_s, zy_keep_off,
                      threshold, easy_margin):
    i = pl.program_id(0)
    j = pl.program_id(1)

    feat = feat_ref[...]                     # (TB, Dp) L2-normalized * s
    w_raw = w_ref[...]                       # (TC, Dp) raw padded weights

    # Fused weight L2 normalization: f32 compute, matmul-operand dtype out.
    w_f32 = w_raw.astype(jnp.float32)
    w_sumsq = jnp.sum(w_f32 * w_f32, axis=-1, keepdims=True)
    w = (w_f32 * lax.rsqrt(jnp.maximum(w_sumsq, 1e-12))).astype(w_raw.dtype)

    fc7 = lax.dot_general(                   # (TB, TC), f32 accumulation
        feat, w, dimension_numbers=(((1,), (1,)), ((), ())),
        preferred_element_type=jnp.float32)

    has_label = flag_ref[i * pl.num_programs(1) + j] != 0

    @pl.when(has_label)
    def _():
        label = label_ref[...]               # (TB, 1) i32; padded rows == Cp
        class_ids = lax.broadcasted_iota(jnp.int32, fc7.shape, 1) + j * tile_c
        one_hot = (class_ids == label).astype(jnp.float32)
        zy = jnp.sum(fc7 * one_hot, axis=-1, keepdims=True)   # target logit
        cos_t = zy * inv_s
        if easy_margin:
            cond = jnp.maximum(cos_t, 0.0)
            zy_keep = zy
        else:
            cond = jnp.maximum(cos_t - threshold, 0.0)
            zy_keep = zy - zy_keep_off                        # zy - s*mm
        sin_t = jnp.sqrt(jnp.maximum(1.0 - cos_t * cos_t, 0.0))
        new_zy = cos_t * cos_m_s - sin_t * sin_m_s
        # torch's `cond.byte()` truncates the non-negative float, so the
        # predicate is exactly cond >= 1.0.
        new_zy = jnp.where(cond >= 1.0, new_zy, zy_keep)
        out_ref[...] = (fc7 + (new_zy - zy) * one_hot).astype(out_ref.dtype)

    @pl.when(jnp.logical_not(has_label))
    def _():
        out_ref[...] = fc7.astype(out_ref.dtype)


def lmcl_forward(feat, weights, label, *, s=7.0, m=0.2, easy_margin=False,
                 operand_dtype=jnp.bfloat16):
    """feat: (B, D), weights: (C, D), label: (B,) int -> (B, C) f32 logits."""
    B, D = feat.shape
    C, D2 = weights.shape
    assert D == D2
    operand_dtype = jnp.dtype(operand_dtype)

    # ---- pad to lane/sublane/MXU friendly sizes -----------------------------
    Dp = _round_up(D, 128)
    TB = min(512, _round_up(B, 16))          # batch tile; TB == Bp for B<=512,
    Bp = _round_up(B, TB)                    # so weights stream from HBM once.
    TC = min(512, _round_up(C, 128))         # class tile (lane-dense output)
    Cp = _round_up(C, TC)
    n_bi, n_cj = Bp // TB, Cp // TC

    # ---- padded operands ----------------------------------------------------
    # TODO(synk): in a real module, pad/cast the weight parameter once at init
    # instead of per forward call; for very large D add a D-contraction grid
    # axis ("arbitrary") with an f32 acc scratch so (TB,Dp)+(TC,Dp) tiles stay
    # inside v7x's 64 MiB VMEM.
    if feat.shape == (Bp, Dp) and feat.dtype == jnp.float32:
        feat_p = feat
    else:
        feat_p = jnp.zeros((Bp, Dp), jnp.float32).at[:B, :D].set(
            feat.astype(jnp.float32))
    if weights.shape == (Cp, Dp) and weights.dtype == operand_dtype:
        w_p = weights
    else:
        w_p = jnp.zeros((Cp, Dp), operand_dtype).at[:C, :D].set(
            weights.astype(operand_dtype))
    # Padded batch rows get an out-of-range label so they never match a class.
    label_p = jnp.full((Bp, 1), Cp, jnp.int32).at[:B, 0].set(
        label.astype(jnp.int32))

    # ---- hoisted feat normalization (once, not per class tile) --------------
    feat_l2 = _l2norm_rows(feat_p, scale=s, row_tile=TB, out_dtype=operand_dtype)

    # ---- per-(batch-tile, class-tile) "contains a target label" flags -------
    lab_tile = label_p[:, 0] // TC                                    # (Bp,)
    flags = jnp.any(
        lab_tile.reshape(n_bi, TB, 1)
        == jnp.arange(n_cj, dtype=jnp.int32)[None, None, :],
        axis=1).astype(jnp.int32).reshape(-1)                         # (n_bi*n_cj,)

    kernel = functools.partial(
        _lmcl_tile_kernel,
        tile_c=TC,
        inv_s=1.0 / float(s),
        cos_m_s=math.cos(m) * float(s),
        sin_m_s=math.sin(m) * float(s),
        zy_keep_off=float(s) * math.sin(math.pi - m) * m,
        threshold=math.cos(math.pi - m),
        easy_margin=easy_margin)

    op_bytes = operand_dtype.itemsize
    step_bytes = (TB * Dp * op_bytes           # feat tile
                  + TC * Dp * op_bytes         # weight tile
                  + TB * TC * 4                # f32 output tile
                  + TB * 128 * 4)              # (TB,1) i32 label pads to 128 lanes

    out_p = pl.pallas_call(
        kernel,
        out_shape=jax.ShapeDtypeStruct((Bp, Cp), jnp.float32),
        grid_spec=pltpu.PrefetchScalarGridSpec(
            num_scalar_prefetch=1,
            grid=(n_bi, n_cj),
            in_specs=[
                pl.BlockSpec((TB, 1), lambda i, j, flg: (i, 0)),      # labels
                pl.BlockSpec((TB, Dp), lambda i, j, flg: (i, 0)),     # feat_l2
                pl.BlockSpec((TC, Dp), lambda i, j, flg: (j, 0)),     # weights
            ],
            out_specs=pl.BlockSpec((TB, TC), lambda i, j, flg: (i, j)),
        ),
        compiler_params=pltpu.CompilerParams(
            dimension_semantics=("parallel", "parallel"),
            vmem_limit_bytes=_vmem_limit_bytes(step_bytes)),
    )(flags, label_p, feat_l2, w_p)

    return out_p[:B, :C]


def lmcl_reference(feat, weights, label, *, s=7.0, m=0.2, easy_margin=False,
                   operand_dtype=jnp.float32):
    """Pure-JAX reference mirroring the PyTorch forward (general C).

    operand_dtype=float32 reproduces the torch module exactly; bfloat16
    mirrors the kernel's operand precision (normalization in f32)."""
    C = weights.shape[0]
    cos_m, sin_m = math.cos(m), math.sin(m)
    mm = math.sin(math.pi - m) * m
    threshold = math.cos(math.pi - m)
    feat_l2 = feat / jnp.linalg.norm(feat, axis=-1, keepdims=True) * s
    w = weights.astype(operand_dtype).astype(jnp.float32)
    w_l2 = w / jnp.linalg.norm(w, axis=-1, keepdims=True)
    fc7 = jnp.dot(feat_l2.astype(operand_dtype), w_l2.astype(operand_dtype).T,
                  preferred_element_type=jnp.float32)
    one_hot = jax.nn.one_hot(label, C, dtype=fc7.dtype)
    zy = jnp.sum(fc7 * one_hot, axis=-1, keepdims=True)
    cos_t = zy / s
    cond = (jnp.maximum(cos_t, 0.0) if easy_margin
            else jnp.maximum(cos_t - threshold, 0.0))
    sin_t = jnp.sqrt(jnp.maximum(1.0 - cos_t * cos_t, 0.0))
    new_zy = (cos_t * cos_m - sin_t * sin_m) * s
    zy_keep = zy if easy_margin else zy - s * mm
    new_zy = jnp.where(jnp.floor(cond) >= 1.0, new_zy, zy_keep)
    return fc7 + (new_zy - zy) * one_hot


if __name__ == "__main__":
    B, D, C = 8, 32, NUM_OF_CLASSES

    key = jax.random.PRNGKey(0)
    k_feat, k_w, k_lab = jax.random.split(key, 3)
    feat = jax.random.normal(k_feat, (B, D), dtype=jnp.float32)
    # nn.Parameter(torch.randn(num_classes, feat_dim)) -> deterministic normal
    weights = jax.random.normal(k_w, (C, D), dtype=jnp.float32)
    label = jax.random.randint(k_lab, (B,), 0, C, dtype=jnp.int32)

    # Default path: bf16-resident operands, f32 accumulation / epilogue.
    out = lmcl_forward(feat, weights, label)
    jax.block_until_ready(out)
    ref_bf16 = lmcl_reference(feat, weights, label, operand_dtype=jnp.bfloat16)
    assert out.shape == (B, C)
    assert jnp.allclose(out, ref_bf16, atol=2e-2, rtol=2e-2), "bf16 mismatch"

    # Full-f32 fallback path: exact mirror of the PyTorch forward.
    out32 = lmcl_forward(feat, weights, label, operand_dtype=jnp.float32)
    ref32 = lmcl_reference(feat, weights, label, operand_dtype=jnp.float32)
    assert jnp.allclose(out32, ref32, atol=1e-3, rtol=1e-3), "f32 mismatch"

    # Odd batch size: exercises batch padding / out-of-range padded labels.
    out_b = lmcl_forward(feat[:6], weights, label[:6])
    ref_b = lmcl_reference(feat[:6], weights, label[:6],
                           operand_dtype=jnp.bfloat16)
    assert out_b.shape == (6, C)
    assert jnp.allclose(out_b, ref_b, atol=2e-2, rtol=2e-2), "padded mismatch"

    print("KERNEL_OK")
</pallas_src>

<mosaic_0001>
module attributes {stable_mosaic.version = 11 : i64} {
  func.func @_l2norm_rows_kernel(%arg0: i32, %arg1: memref<16x128xf32, #tpu.memory_space<vmem>>, %arg2: memref<16x128xbf16, #tpu.memory_space<vmem>>) attributes {dimension_semantics = [#tpu.dimension_semantics<parallel>], iteration_bounds = array<i64: 1>, scalar_prefetch = 0 : i64, scratch_operands = 0 : i64, tpu.core_type = #tpu.core_type<tc>, window_params = [{transform_indices = @transform_0, window_bounds = array<i64: 16, 128>}, {transform_indices = @transform_1, window_bounds = array<i64: 16, 128>}]} {
    %c0 = arith.constant 0 : index
    %c0_0 = arith.constant 0 : index
    %0 = vector.load %arg1[%c0, %c0_0] : memref<16x128xf32, #tpu.memory_space<vmem>>, vector<16x128xf32>
    %1 = arith.mulf %0, %0 : vector<16x128xf32>
    %cst = arith.constant dense<0.000000e+00> : vector<16xf32>
    %2 = vector.multi_reduction <add>, %1, %cst [1] : vector<16x128xf32> to vector<16xf32>
    %3 = vector.shape_cast %2 : vector<16xf32> to vector<16x1xf32>
    %cst_1 = arith.constant 9.99999996E-13 : f32
    %4 = vector.broadcast %cst_1 : f32 to vector<16x1xf32>
    %5 = arith.maximumf %3, %4 : vector<16x1xf32>
    %6 = math.rsqrt %5 : vector<16x1xf32>
    %cst_2 = arith.constant 7.000000e+00 : f32
    %7 = vector.broadcast %cst_2 : f32 to vector<16x1xf32>
    %8 = arith.mulf %6, %7 : vector<16x1xf32>
    %9 = vector.broadcast %8 : vector<16x1xf32> to vector<16x128xf32>
    %10 = arith.mulf %0, %9 : vector<16x128xf32>
    %11 = arith.truncf %10 : vector<16x128xf32> to vector<16x128xbf16>
    %c0_3 = arith.constant 0 : index
    %c0_4 = arith.constant 0 : index
    %12 = vector.load %arg2[%c0_3, %c0_4] : memref<16x128xbf16, #tpu.memory_space<vmem>>, vector<16x128xbf16>
    tpu.vector_store %arg2[%c0_3, %c0_4], %11 {strides = array<i32>} : memref<16x128xbf16, #tpu.memory_space<vmem>>, vector<16x128xbf16>,
    return
  }
  func.func @transform_0(%arg0: i32) -> (i32, i32) {
    %c0_i32 = arith.constant 0 : i32
    %c0_i32_0 = arith.constant 0 : i32
    return %arg0, %c0_i32 : i32, i32
  }
  func.func @transform_1(%arg0: i32) -> (i32, i32) {
    %c0_i32 = arith.constant 0 : i32
    %c0_i32_0 = arith.constant 0 : i32
    return %arg0, %c0_i32 : i32, i32
  }
}

</mosaic_0001>

<bundles_post_ra>
// kernel: tpu_custom_call.1
= control target key start
LH: loop header
LB: loop body
LE: loop exit
PB: predicated region body
PF: predicated region fallthrough
CT: control target
= control target key end

     0   :  { %6 = vsyncpa [#allocation3], 0  ;;  %s173_s0 = inlined_call_operand.hbm [shape: f32[16,128], index: 0, kind: input, shape index: {}]   ;;  %s174_s1 = inlined_call_operand.hbm [shape: bf16[16,128], index: 1, kind: output, shape index: {}]  }
   0x1   :  { %7 = vsyncpa [#allocation4], 0  ;;  %s133_s6 = smov [#allocation2]   ;;  %s85_s10 = scalar_lea.hbm %s173_s0, 256 }
   0x2   :  { %s13_s7 = sshll.u32 %s133_s6, 4  ;;  %p86_p0 = scmp.ne.s32.totalorder %s173_s0, %s85_s10  ;;  %s14_s7 = int_to_ptr.vmem [resolvable:$true] %s13_s7 }
   0x3   :  { %p89_p1 = scmp.lt.u32.totalorder %s85_s10, %s173_s0 }
   0x5   :  { %p91_p2 = pnand %p89_p1, %p86_p0 }
   0x7   :  { %94 = shalt.err (!%p91_p2)
}
   0x8   :  { %s95_s15 = scalar_lea.vmem %s14_s7, 256  ;;  %p100_p4 = scmp.lt.s32.totalorder %s14_s7, %s14_s7 }
   0x9   :  { %p96_p3 = scmp.ne.s32.totalorder %s14_s7, %s95_s15  ;;  %p101_p5 = scmp.lt.s32.totalorder %s95_s15, %s95_s15 }
   0xb   :  { %p102_p6 = por %p101_p5, %p100_p4 }
   0xd   :  { %p103_p7 = pnand %p102_p6, %p96_p3 }
   0xf   :  { %106 = shalt.err (!%p103_p7)
}
  0x10   :  { %s134_s16 = smov 128   ;;  %s135_s17 = smov 8  }
  0x11   :  { %19 = dma.hbm_to_vmem [thread:$0]  %s173_s0, 256, %s14_s7, [#allocation3], %s134_s16, %s134_s16, %s135_s17  }
  0x12   :  { %129 = dma.done.wait [#allocation3], 256  }
  0x13   :  { %130 = vsyncadd [#allocation3], 4294967040  ;;  %v23_v0 = vld [vmem:[#allocation2] sm:$0xff]  ;;  %v24_v1 = vld [vmem:[#allocation2 + $0x8] sm:$0xff]  ;;  %s136_s20 = smov [#allocation5]  }
  0x14   :  { %v25_v2 = vmul.f32 %v23_v0, %v23_v0  ;;  %v26_v3 = vmul.f32 %v24_v1, %v24_v1  ;;  %s54_s0 = sshll.u32 %s136_s20, 4  ;;  %s55_s0 = int_to_ptr.vmem [resolvable:$true] %s54_s0 }
  0x15   :  { %s107_s21 = scalar_lea.vmem %s55_s0, 128  ;;  %p112_p9 = scmp.lt.s32.totalorder %s55_s0, %s55_s0 }
  0x16   :  { %27 = vadd.xlane.f32.xlu0 %v25_v2  ;;  %p108_p8 = scmp.ne.s32.totalorder %s55_s0, %s107_s21  ;;  %p113_p10 = scmp.lt.s32.totalorder %s107_s21, %s107_s21 }
  0x18   :  { %p114_p11 = por %p113_p10, %p112_p9 }
  0x1a   :  { %29 = vadd.xlane.f32.xlu0 %v26_v3  ;;  %p115_p12 = pnand %p114_p11, %p108_p8 }
  0xa3   :  { %v28_v4 = vpop.xlane.xlu0 %27 }
  0xa4   :  { %v31_v5 = vmax.f32 %v28_v4, 1e-12 }
  0xa6   :  { %81 = vrsqrt.f32 %v31_v5 }
  0xa7   :  { %v30_v6 = vpop.xlane.xlu0 %29 }
  0xa8   :  { %v32_v7 = vmax.f32 %v30_v6, 1e-12 }
  0xaa   :  { %83 = vrsqrt.f32 %v32_v7 }
  0xb0   :  { %v82_v8 = vpop.eup %81 }
  0xb1   :  { %v35_v9 = vmul.f32 7.0, %v82_v8 }
  0xb3   :  { %v37_v12 = vmul.f32 %v35_v9, %v23_v0 }
  0xb4   :  { %v84_v10 = vpop.eup %83 }
  0xb5   :  { %v36_v11 = vmul.f32 7.0, %v84_v10 }
  0xb7   :  { %v38_v13 = vmul.f32 %v36_v11, %v24_v1 }
  0xb9   :  { %v73_v14 = vpack.c.bf16 %v38_v13, %v37_v12 }
  0xbb   :  { %74 = vst [vmem:[#allocation5] sm:$0xff] %v73_v14  }
  0xbc   :  { %118 = shalt.err (!%p115_p12)
}
  0xbd   :  { %s119_s24 = scalar_lea.hbm %s174_s1, 128 }
  0xbe   :  { %p120_p13 = scmp.ne.s32.totalorder %s174_s1, %s119_s24  ;;  %p123_p0 = scmp.lt.u32.totalorder %s119_s24, %s174_s1 }
  0xc0   :  { %p125_p1 = pnand %p123_p0, %p120_p13 }
  0xc2   :  { %128 = shalt.err (!%p125_p1)
}
  0xc3   :  { %s137_s29 = smov 64   ;;  %s138_s30 = smov 4  }
  0xc4   :  { %60 = dma.vmem_to_hbm [thread:$0]  %s55_s0, 128, %s174_s1, [#allocation4], %s137_s29, %s137_s29, %s138_s30  }
  0xc5   :  { %131 = dma.done.wait [#allocation4], 128  }
  0xc6   :  { %132 = vsyncadd [#allocation4], 4294967168 }
  0xc7   :  { %64 = vsyncpa [#allocation3], 1 }
  0xc8   :  { %65 = vsyncpa [#allocation4], 1 }

</bundles_post_ra>
